<compile_context>
chip_gen: v7x
topology: tpu7x:2x2x1
jax: 0.10.0
libtpu: 0.0.40
codegen_flags: <defaults>
</compile_context>

<pallas_src>
import functools

import jax
import jax.numpy as jnp
import numpy as np
from jax.experimental import pallas as pl
from jax.experimental.pallas import tpu as pltpu

# Fixed (non-trainable) Sobel weights from the module's __init__ (reference only;
# the kernel uses the equivalent separable formulation).
_SOBEL_HORI = ((-1.0, -2.0, -1.0), (0.0, 0.0, 0.0), (1.0, 2.0, 1.0))
_SOBEL_VERT = ((-1.0, 0.0, 1.0), (-2.0, 0.0, 2.0), (-1.0, 0.0, 1.0))

_ENHANCE_FACTOR = 2.0
_THRESHOLD = 0.01


# --------------------------------------------------------------------------- #
# Pass 1: fused channel-mean + separable Sobel + pass-through write + min/max. #
# --------------------------------------------------------------------------- #
def _edge_pass1_kernel(xc_ref, xa_ref, xb_ref, out_ref, mm_ref):
    """xc_ref : (1, C, TH, W)  f32  center strip of im.
       xa_ref : (1, C, HR, W)  f32  block holding the row just above the strip.
       xb_ref : (1, C, HR, W)  f32  block holding the row just below the strip.
       out_ref: (1, C+1, TH, W) f32 channels 0..C-1 = im copy, channel C = raw edge.
       mm_ref : (1, 1, 1, 2)   f32  per-strip [min, max] of the raw edge."""
    h = pl.program_id(1)
    nh = pl.num_programs(1)
    c = xc_ref.shape[1]
    th = xc_ref.shape[2]
    w = xc_ref.shape[3]
    hr = xa_ref.shape[2]
    inv_c = 1.0 / c

    # Channel mean of the strip (fused; no XLA mean/pad/stack staging).
    m_mid = xc_ref[0, 0, :, :]
    for ci in range(1, c):
        m_mid = m_mid + xc_ref[0, ci, :, :]
    m_mid = m_mid * inv_c                                    # (TH, W)

    # Halo rows: channel mean of the row above / below the strip, zeroed at the
    # image border (== conv2d's zero padding).
    m_top = xa_ref[0, 0, hr - 1:hr, :]
    m_bot = xb_ref[0, 0, 0:1, :]
    for ci in range(1, c):
        m_top = m_top + xa_ref[0, ci, hr - 1:hr, :]
        m_bot = m_bot + xb_ref[0, ci, 0:1, :]
    m_top = jnp.where(h == 0, 0.0, m_top * inv_c)            # (1, W)
    m_bot = jnp.where(h == nh - 1, 0.0, m_bot * inv_c)       # (1, W)

    # Row-shifted planes: up[i,:] = mean at row i-1, down[i,:] = mean at row i+1.
    up = jnp.concatenate([m_top, m_mid[0:th - 1, :]], axis=0)      # (TH, W)
    down = jnp.concatenate([m_mid[1:th, :], m_bot], axis=0)        # (TH, W)

    # Separable Sobel (cross-correlation with zero padding), 6 MACs instead of 12:
    #   hori = [-1,0,1]^T (rows) (x) [1,2,1] (cols);  vert = [1,2,1]^T (x) [-1,0,1]
    d = down - up                                            # vertical difference
    s = up + 2.0 * m_mid + down                              # vertical smoothing

    zcol = jnp.zeros((th, 1), dtype=jnp.float32)
    d_l = jnp.concatenate([zcol, d[:, 0:w - 1]], axis=1)     # d at (i, j-1), 0 at j=0
    d_r = jnp.concatenate([d[:, 1:w], zcol], axis=1)         # d at (i, j+1), 0 at j=W-1
    s_l = jnp.concatenate([zcol, s[:, 0:w - 1]], axis=1)
    s_r = jnp.concatenate([s[:, 1:w], zcol], axis=1)

    hori = d_l + 2.0 * d + d_r
    vert = s_r - s_l
    edge = jnp.sqrt(hori * hori + vert * vert)               # (TH, W)

    # Fused pass-through + raw-edge write (channel concat done in-kernel; the
    # im planes are streamed exactly once through the whole pipeline).
    out_ref[:, 0:c, :, :] = xc_ref[...]
    out_ref[:, c:c + 1, :, :] = edge[None, None, :, :]

    # Packed per-strip [min, max] partial (single tiny DMA per step).
    lane2 = jax.lax.broadcasted_iota(jnp.int32, (1, 1, 1, 2), 3)
    mm_ref[...] = jnp.where(lane2 == 0, jnp.min(edge), jnp.max(edge))


# --------------------------------------------------------------------------- #
# Pass 2: normalize + enhance + clamp, in-place update of channel C only.      #
# --------------------------------------------------------------------------- #
def _edge_pass2_kernel(stats_ref, edge_ref, out_ref):
    """stats_ref: (2,) f32 in SMEM = [e_min, 1/(e_max - e_min)] global scalars.
       edge_ref : (1, 1, TH, W) f32 raw-edge block (channel C of the aliased out).
       out_ref  : (1, 1, TH, W) f32 same block, overwritten in place."""
    e_min = stats_ref[0]
    inv_range = stats_ref[1]

    e = (edge_ref[0, 0, :, :] - e_min) * inv_range           # global [0,1] norm
    wgt = e / (e + _THRESHOLD)                               # Enhancer(2.0, 0.01)
    wgt = wgt * (_ENHANCE_FACTOR - 1.0) + 1.0
    out_ref[...] = (jnp.clip(e * wgt, 0.0, 1.0) * 255.0)[None, None, :, :]


# --------------------------------------------------------------------------- #
# Wrapper                                                                      #
# --------------------------------------------------------------------------- #
def _round_up(x, m):
    return (x + m - 1) // m * m


def _vmem_capacity_bytes():
    try:
        info = pltpu.get_tpu_info()
        cap = getattr(info, "vmem_capacity_bytes", None)
        if cap:
            return int(cap)
    except Exception:
        pass
    return 64 << 20                       # conservative default (v7x per-core VMEM)


def _choose_row_tile(H, W, C, vmem_cap):
    """Largest multiple-of-8 divisor of H whose pass-1 working set (double
    buffered in+out strips) stays within ~1/4 of device VMEM (generation aware:
    bigger strips on 128 MiB v5e/v6e, smaller on 64 MiB v7x)."""
    if H % 8 != 0:
        return H                          # single-strip fallback (tiny images only)
    budget = max(vmem_cap // 4, 4 << 20)
    per_row = 2 * (2 * C + 1) * _round_up(max(W, 1), 128) * 4
    max_rows = max(8, budget // max(per_row, 1))
    best = 8
    cand = 8
    while cand <= min(H, max_rows):
        if H % cand == 0:
            best = cand
        cand += 8
    return best


def _vmem_limits(C, W, th, vmem_cap):
    """Per-pass vmem_limit_bytes derived from the actual block footprints."""
    lane_w = _round_up(max(W, 1), 128)
    strip = _round_up(th, 8) * lane_w * 4
    halo = 8 * lane_w * 4
    p1 = 2 * ((2 * C + 1) * strip + 2 * C * halo + 8 * 128 * 4)   # double-buffered blocks
    p2 = 2 * (2 * strip) + 8 * 128 * 4
    cap = max(int(vmem_cap * 0.7), 16 << 20)
    lim1 = int(min(max(p1 + (4 << 20), 16 << 20), cap))
    lim2 = int(min(max(p2 + (2 << 20), 16 << 20), cap))
    return lim1, lim2


@functools.partial(jax.jit, static_argnames=("th", "vmem_lim1", "vmem_lim2"))
def _edge_embedding_impl(im, th, vmem_lim1, vmem_lim2):
    B, C, H, W = im.shape
    nh = H // th

    if H % 8 == 0 and th % 8 == 0:
        halo_rows = 8                     # 8-row blocks holding the halo rows
        hb = th // 8                      # strip height in 8-row block units
        n_hblk = H // 8
    else:
        halo_rows = H                     # fallback: single strip, halos unused
        hb = 1
        n_hblk = 1

    cparams1 = pltpu.CompilerParams(
        dimension_semantics=("parallel", "parallel"),
        vmem_limit_bytes=vmem_lim1)
    cparams2 = pltpu.CompilerParams(
        dimension_semantics=("parallel", "parallel"),
        vmem_limit_bytes=vmem_lim2)

    # ---- Pass 1: fused mean + Sobel + pass-through write + min/max partials. ----
    out1, mm = pl.pallas_call(
        _edge_pass1_kernel,
        grid=(B, nh),
        in_specs=[
            pl.BlockSpec((1, C, th, W), lambda b, h: (b, 0, h, 0)),
            pl.BlockSpec((1, C, halo_rows, W),
                         lambda b, h: (b, 0, jnp.maximum(h * hb - 1, 0), 0)),
            pl.BlockSpec((1, C, halo_rows, W),
                         lambda b, h: (b, 0, jnp.minimum((h + 1) * hb, n_hblk - 1), 0)),
        ],
        out_specs=(
            pl.BlockSpec((1, C + 1, th, W), lambda b, h: (b, 0, h, 0)),
            pl.BlockSpec((1, 1, 1, 2), lambda b, h: (b, h, 0, 0)),
        ),
        out_shape=(
            jax.ShapeDtypeStruct((B, C + 1, H, W), jnp.float32),
            jax.ShapeDtypeStruct((B, nh, 1, 2), jnp.float32),
        ),
        compiler_params=cparams1,
    )(im, im, im)

    # ---- Tiny scalar glue: exact global min and reciprocal range. ----
    e_min = jnp.min(mm[..., 0])
    e_max = jnp.max(mm[..., 1])
    # NOTE: unguarded like the PyTorch module (a constant image gives inf/nan).
    inv_range = 1.0 / (e_max - e_min)
    stats = jnp.stack([e_min, inv_range]).astype(jnp.float32)     # (2,)

    # ---- Pass 2: edge-channel-only in-place update (aliased output buffer). ----
    out = pl.pallas_call(
        _edge_pass2_kernel,
        grid=(B, nh),
        in_specs=[
            pl.BlockSpec(memory_space=pltpu.MemorySpace.SMEM),           # scalars
            pl.BlockSpec((1, 1, th, W), lambda b, h: (b, C, h, 0)),      # raw edge
        ],
        out_specs=pl.BlockSpec((1, 1, th, W), lambda b, h: (b, C, h, 0)),
        out_shape=jax.ShapeDtypeStruct((B, C + 1, H, W), jnp.float32),
        input_output_aliases={1: 0},      # pass-through channels kept, not re-streamed
        compiler_params=cparams2,
    )(stats, out1)
    return out


def edge_embedding(im, row_tile=None):
    """EdgeEmbedding.forward (enhence_feature=True): (B,C,H,W) -> (B,C+1,H,W)."""
    im = jnp.asarray(im, jnp.float32)
    B, C, H, W = im.shape
    vmem_cap = _vmem_capacity_bytes()
    if row_tile is None:
        th = _choose_row_tile(H, W, C, vmem_cap)
    else:
        th = int(row_tile)
        if H % th != 0 or not (th == H or th % 8 == 0):
            raise ValueError(
                f"row_tile={th} must divide H={H} and be a multiple of 8 (or equal H)")
    lim1, lim2 = _vmem_limits(C, W, th, vmem_cap)
    return _edge_embedding_impl(im, th, lim1, lim2)


# --------------------------------------------------------------------------- #
# Pure-JAX reference mirroring the PyTorch forward (enhence_feature=True).     #
# --------------------------------------------------------------------------- #
def edge_embedding_reference(im):
    im = im.astype(jnp.float32)
    x3 = jnp.mean(im, axis=1, keepdims=True)                      # (B,1,H,W)
    kh = jnp.array(_SOBEL_HORI, jnp.float32)[None, None]          # (1,1,3,3) OIHW
    kv = jnp.array(_SOBEL_VERT, jnp.float32)[None, None]

    def conv(x, k):
        return jax.lax.conv_general_dilated(
            x, k, window_strides=(1, 1), padding=((1, 1), (1, 1)),
            dimension_numbers=("NCHW", "OIHW", "NCHW"))

    xh = conv(x3, kh)
    xv = conv(x3, kv)
    edge = jnp.sqrt(xh * xh + xv * xv)
    edge = (edge - edge.min()) / (edge.max() - edge.min())
    w = edge / (edge + _THRESHOLD)
    w = w * (_ENHANCE_FACTOR - 1.0) + 1.0
    edge = jnp.clip(edge * w, 0.0, 1.0)
    return jnp.concatenate([im, edge * 255.0], axis=1)


if __name__ == "__main__":
    key = jax.random.PRNGKey(0)
    B, C, H, W = 2, 3, 16, 16      # im has 3 channels; cat(im, edge) -> 4 == att in_channels
    im = jax.random.uniform(key, (B, C, H, W), dtype=jnp.float32)

    ref = jax.block_until_ready(edge_embedding_reference(im))

    # Auto tile (one strip at this size) plus a forced 2-strip tiling so the
    # halo-block path is exercised and checked.
    for rt in (None, 8):
        out = jax.block_until_ready(edge_embedding(im, row_tile=rt))
        assert out.shape == (B, C + 1, H, W)
        # Pass-through channels must be bit-exact (written once in pass 1, never touched again).
        np.testing.assert_array_equal(np.asarray(out[:, :C]), np.asarray(im))
        # Edge channel: f32 math end to end, exact divide -> tight tolerance on 0..255 scale.
        np.testing.assert_allclose(np.asarray(out[:, C]), np.asarray(ref[:, C]),
                                   rtol=1e-3, atol=0.1)

    print("KERNEL_OK")
</pallas_src>

<mosaic_0001>
module attributes {stable_mosaic.version = 11 : i64} {
  func.func @_edge_pass2_kernel(%arg0: i32, %arg1: i32, %arg2: memref<2xf32, #tpu.memory_space<smem>>, %arg3: memref<1x1x16x16xf32, #tpu.memory_space<vmem>>, %arg4: memref<1x1x16x16xf32, #tpu.memory_space<vmem>>) attributes {dimension_semantics = [#tpu.dimension_semantics<parallel>, #tpu.dimension_semantics<parallel>], iteration_bounds = array<i64: 2, 1>, scalar_prefetch = 0 : i64, scratch_operands = 0 : i64, tpu.core_type = #tpu.core_type<tc>, window_params = [{transform_indices = @transform_0, window_bounds = array<i64: 2>}, {transform_indices = @transform_1, window_bounds = array<i64: 1, 1, 16, 16>}, {transform_indices = @transform_2, window_bounds = array<i64: 1, 1, 16, 16>}]} {
    %c0 = arith.constant 0 : index
    %0 = memref.load %arg2[%c0] : memref<2xf32, #tpu.memory_space<smem>>
    %c1 = arith.constant 1 : index
    %1 = memref.load %arg2[%c1] : memref<2xf32, #tpu.memory_space<smem>>
    %c0_0 = arith.constant 0 : index
    %c0_1 = arith.constant 0 : index
    %c0_2 = arith.constant 0 : index
    %c0_3 = arith.constant 0 : index
    %2 = vector.load %arg3[%c0_0, %c0_1, %c0_2, %c0_3] : memref<1x1x16x16xf32, #tpu.memory_space<vmem>>, vector<1x1x16x16xf32>
    %3 = vector.shape_cast %2 : vector<1x1x16x16xf32> to vector<16x16xf32>
    %4 = vector.broadcast %0 : f32 to vector<16x16xf32>
    %5 = arith.subf %3, %4 : vector<16x16xf32>
    %6 = vector.broadcast %1 : f32 to vector<16x16xf32>
    %7 = arith.mulf %5, %6 : vector<16x16xf32>
    %cst = arith.constant 0.00999999977 : f32
    %8 = vector.broadcast %cst : f32 to vector<16x16xf32>
    %9 = arith.addf %7, %8 : vector<16x16xf32>
    %10 = arith.divf %7, %9 : vector<16x16xf32>
    %cst_4 = arith.constant 1.000000e+00 : f32
    %11 = vector.broadcast %cst_4 : f32 to vector<16x16xf32>
    %12 = arith.mulf %10, %11 : vector<16x16xf32>
    %cst_5 = arith.constant 1.000000e+00 : f32
    %13 = vector.broadcast %cst_5 : f32 to vector<16x16xf32>
    %14 = arith.addf %12, %13 : vector<16x16xf32>
    %15 = arith.mulf %7, %14 : vector<16x16xf32>
    %cst_6 = arith.constant 0.000000e+00 : f32
    %cst_7 = arith.constant 1.000000e+00 : f32
    %16 = vector.broadcast %cst_6 : f32 to vector<16x16xf32>
    %17 = arith.maximumf %16, %15 : vector<16x16xf32>
    %18 = vector.broadcast %cst_7 : f32 to vector<16x16xf32>
    %19 = arith.minimumf %18, %17 : vector<16x16xf32>
    %cst_8 = arith.constant 2.550000e+02 : f32
    %20 = vector.broadcast %cst_8 : f32 to vector<16x16xf32>
    %21 = arith.mulf %19, %20 : vector<16x16xf32>
    %22 = vector.shape_cast %21 : vector<16x16xf32> to vector<1x1x16x16xf32>
    %c0_9 = arith.constant 0 : index
    %c0_10 = arith.constant 0 : index
    %c0_11 = arith.constant 0 : index
    %c0_12 = arith.constant 0 : index
    %23 = vector.load %arg4[%c0_9, %c0_10, %c0_11, %c0_12] : memref<1x1x16x16xf32, #tpu.memory_space<vmem>>, vector<1x1x16x16xf32>
    tpu.vector_store %arg4[%c0_9, %c0_10, %c0_11, %c0_12], %22 {strides = array<i32>} : memref<1x1x16x16xf32, #tpu.memory_space<vmem>>, vector<1x1x16x16xf32>,
    return
  }
  func.func @transform_0(%arg0: i32, %arg1: i32) -> i32 {
    %c0_i32 = arith.constant 0 : i32
    %c0_i32_0 = arith.constant 0 : i32
    return %c0_i32 : i32
  }
  func.func @transform_1(%arg0: i32, %arg1: i32) -> (i32, i32, i32, i32) {
    %c3_i32 = arith.constant 3 : i32
    %c0_i32 = arith.constant 0 : i32
    %c0_i32_0 = arith.constant 0 : i32
    return %arg0, %c3_i32, %arg1, %c0_i32 : i32, i32, i32, i32
  }
  func.func @transform_2(%arg0: i32, %arg1: i32) -> (i32, i32, i32, i32) {
    %c3_i32 = arith.constant 3 : i32
    %c0_i32 = arith.constant 0 : i32
    %c0_i32_0 = arith.constant 0 : i32
    return %arg0, %c3_i32, %arg1, %c0_i32 : i32, i32, i32, i32
  }
}

module attributes {stable_mosaic.version = 11 : i64} {
  func.func @_edge_pass1_kernel(%arg0: i32, %arg1: i32, %arg2: memref<1x3x16x16xf32, #tpu.memory_space<vmem>>, %arg3: memref<1x3x8x16xf32, #tpu.memory_space<vmem>>, %arg4: memref<1x3x8x16xf32, #tpu.memory_space<vmem>>, %arg5: memref<1x4x16x16xf32, #tpu.memory_space<vmem>>, %arg6: memref<1x1x1x2xf32, #tpu.memory_space<vmem>>) attributes {dimension_semantics = [#tpu.dimension_semantics<parallel>, #tpu.dimension_semantics<parallel>], iteration_bounds = array<i64: 2, 1>, scalar_prefetch = 0 : i64, scratch_operands = 0 : i64, tpu.core_type = #tpu.core_type<tc>, window_params = [{transform_indices = @transform_0, window_bounds = array<i64: 1, 3, 16, 16>}, {transform_indices = @transform_1, window_bounds = array<i64: 1, 3, 8, 16>}, {transform_indices = @transform_2, window_bounds = array<i64: 1, 3, 8, 16>}, {transform_indices = @transform_3, window_bounds = array<i64: 1, 4, 16, 16>}, {transform_indices = @transform_4, window_bounds = array<i64: 1, 1, 1, 2>}]} {
    %c0 = arith.constant 0 : index
    %c0_0 = arith.constant 0 : index
    %c0_1 = arith.constant 0 : index
    %c0_2 = arith.constant 0 : index
    %0 = vector.load %arg2[%c0, %c0_0, %c0_1, %c0_2] : memref<1x3x16x16xf32, #tpu.memory_space<vmem>>, vector<1x1x16x16xf32>
    %1 = vector.shape_cast %0 : vector<1x1x16x16xf32> to vector<16x16xf32>
    %c0_3 = arith.constant 0 : index
    %c1 = arith.constant 1 : index
    %c0_4 = arith.constant 0 : index
    %c0_5 = arith.constant 0 : index
    %2 = vector.load %arg2[%c0_3, %c1, %c0_4, %c0_5] : memref<1x3x16x16xf32, #tpu.memory_space<vmem>>, vector<1x1x16x16xf32>
    %3 = vector.shape_cast %2 : vector<1x1x16x16xf32> to vector<16x16xf32>
    %4 = arith.addf %1, %3 : vector<16x16xf32>
    %c0_6 = arith.constant 0 : index
    %c2 = arith.constant 2 : index
    %c0_7 = arith.constant 0 : index
    %c0_8 = arith.constant 0 : index
    %5 = vector.load %arg2[%c0_6, %c2, %c0_7, %c0_8] : memref<1x3x16x16xf32, #tpu.memory_space<vmem>>, vector<1x1x16x16xf32>
    %6 = vector.shape_cast %5 : vector<1x1x16x16xf32> to vector<16x16xf32>
    %7 = arith.addf %4, %6 : vector<16x16xf32>
    %cst = arith.constant 0.333333343 : f32
    %8 = vector.broadcast %cst : f32 to vector<16x16xf32>
    %9 = arith.mulf %7, %8 : vector<16x16xf32>
    %c0_9 = arith.constant 0 : index
    %c0_10 = arith.constant 0 : index
    %c7 = arith.constant 7 : index
    %c0_11 = arith.constant 0 : index
    %10 = vector.load %arg3[%c0_9, %c0_10, %c7, %c0_11] : memref<1x3x8x16xf32, #tpu.memory_space<vmem>>, vector<1x1x1x16xf32>
    %11 = vector.shape_cast %10 : vector<1x1x1x16xf32> to vector<1x16xf32>
    %c0_12 = arith.constant 0 : index
    %c0_13 = arith.constant 0 : index
    %c0_14 = arith.constant 0 : index
    %c0_15 = arith.constant 0 : index
    %12 = vector.load %arg4[%c0_12, %c0_13, %c0_14, %c0_15] : memref<1x3x8x16xf32, #tpu.memory_space<vmem>>, vector<1x1x1x16xf32>
    %13 = vector.shape_cast %12 : vector<1x1x1x16xf32> to vector<1x16xf32>
    %c0_16 = arith.constant 0 : index
    %c1_17 = arith.constant 1 : index
    %c7_18 = arith.constant 7 : index
    %c0_19 = arith.constant 0 : index
    %14 = vector.load %arg3[%c0_16, %c1_17, %c7_18, %c0_19] : memref<1x3x8x16xf32, #tpu.memory_space<vmem>>, vector<1x1x1x16xf32>
    %15 = vector.shape_cast %14 : vector<1x1x1x16xf32> to vector<1x16xf32>
    %16 = arith.addf %11, %15 : vector<1x16xf32>
    %c0_20 = arith.constant 0 : index
    %c1_21 = arith.constant 1 : index
    %c0_22 = arith.constant 0 : index
    %c0_23 = arith.constant 0 : index
    %17 = vector.load %arg4[%c0_20, %c1_21, %c0_22, %c0_23] : memref<1x3x8x16xf32, #tpu.memory_space<vmem>>, vector<1x1x1x16xf32>
    %18 = vector.shape_cast %17 : vector<1x1x1x16xf32> to vector<1x16xf32>
    %19 = arith.addf %13, %18 : vector<1x16xf32>
    %c0_24 = arith.constant 0 : index
    %c2_25 = arith.constant 2 : index
    %c7_26 = arith.constant 7 : index
    %c0_27 = arith.constant 0 : index
    %20 = vector.load %arg3[%c0_24, %c2_25, %c7_26, %c0_27] : memref<1x3x8x16xf32, #tpu.memory_space<vmem>>, vector<1x1x1x16xf32>
    %21 = vector.shape_cast %20 : vector<1x1x1x16xf32> to vector<1x16xf32>
    %22 = arith.addf %16, %21 : vector<1x16xf32>
    %c0_28 = arith.constant 0 : index
    %c2_29 = arith.constant 2 : index
    %c0_30 = arith.constant 0 : index
    %c0_31 = arith.constant 0 : index
    %23 = vector.load %arg4[%c0_28, %c2_29, %c0_30, %c0_31] : memref<1x3x8x16xf32, #tpu.memory_space<vmem>>, vector<1x1x1x16xf32>
    %24 = vector.shape_cast %23 : vector<1x1x1x16xf32> to vector<1x16xf32>
    %25 = arith.addf %19, %24 : vector<1x16xf32>
    %c0_i32 = arith.constant 0 : i32
    %26 = arith.cmpi eq, %arg1, %c0_i32 : i32
    %cst_32 = arith.constant 0.333333343 : f32
    %27 = vector.broadcast %cst_32 : f32 to vector<1x16xf32>
    %28 = arith.mulf %22, %27 : vector<1x16xf32>
    %cst_33 = arith.constant 0.000000e+00 : f32
    %29 = vector.broadcast %cst_33 : f32 to vector<1x16xf32>
    %30 = arith.select %26, %29, %28 : vector<1x16xf32>
    %c0_i32_34 = arith.constant 0 : i32
    %31 = arith.cmpi eq, %arg1, %c0_i32_34 : i32
    %cst_35 = arith.constant 0.333333343 : f32
    %32 = vector.broadcast %cst_35 : f32 to vector<1x16xf32>
    %33 = arith.mulf %25, %32 : vector<1x16xf32>
    %cst_36 = arith.constant 0.000000e+00 : f32
    %34 = vector.broadcast %cst_36 : f32 to vector<1x16xf32>
    %35 = arith.select %31, %34, %33 : vector<1x16xf32>
    %36 = vector.extract_strided_slice %9 {offsets = [0, 0], sizes = [15, 16], strides = [1, 1]} : vector<16x16xf32> to vector<15x16xf32>
    %37 = tpu.concatenate %30, %36 in 0 : vector<1x16xf32>, vector<15x16xf32> -> vector<16x16xf32>
    %38 = vector.extract_strided_slice %9 {offsets = [1, 0], sizes = [15, 16], strides = [1, 1]} : vector<16x16xf32> to vector<15x16xf32>
    %39 = tpu.concatenate %38, %35 in 0 : vector<15x16xf32>, vector<1x16xf32> -> vector<16x16xf32>
    %40 = arith.subf %39, %37 : vector<16x16xf32>
    %cst_37 = arith.constant 2.000000e+00 : f32
    %41 = vector.broadcast %cst_37 : f32 to vector<16x16xf32>
    %42 = arith.mulf %41, %9 : vector<16x16xf32>
    %43 = arith.addf %37, %42 : vector<16x16xf32>
    %44 = arith.addf %43, %39 : vector<16x16xf32>
    %cst_38 = arith.constant 0.000000e+00 : f32
    %45 = vector.broadcast %cst_38 : f32 to vector<16x1xf32>
    %46 = vector.extract_strided_slice %40 {offsets = [0, 0], sizes = [16, 15], strides = [1, 1]} : vector<16x16xf32> to vector<16x15xf32>
    %47 = tpu.concatenate %45, %46 in 1 : vector<16x1xf32>, vector<16x15xf32> -> vector<16x16xf32>
    %48 = vector.extract_strided_slice %40 {offsets = [0, 1], sizes = [16, 15], strides = [1, 1]} : vector<16x16xf32> to vector<16x15xf32>
    %49 = tpu.concatenate %48, %45 in 1 : vector<16x15xf32>, vector<16x1xf32> -> vector<16x16xf32>
    %50 = vector.extract_strided_slice %44 {offsets = [0, 0], sizes = [16, 15], strides = [1, 1]} : vector<16x16xf32> to vector<16x15xf32>
    %51 = tpu.concatenate %45, %50 in 1 : vector<16x1xf32>, vector<16x15xf32> -> vector<16x16xf32>
    %52 = vector.extract_strided_slice %44 {offsets = [0, 1], sizes = [16, 15], strides = [1, 1]} : vector<16x16xf32> to vector<16x15xf32>
    %53 = tpu.concatenate %52, %45 in 1 : vector<16x15xf32>, vector<16x1xf32> -> vector<16x16xf32>
    %cst_39 = arith.constant 2.000000e+00 : f32
    %54 = vector.broadcast %cst_39 : f32 to vector<16x16xf32>
    %55 = arith.mulf %54, %40 : vector<16x16xf32>
    %56 = arith.addf %47, %55 : vector<16x16xf32>
    %57 = arith.addf %56, %49 : vector<16x16xf32>
    %58 = arith.subf %53, %51 : vector<16x16xf32>
    %59 = arith.mulf %57, %57 : vector<16x16xf32>
    %60 = arith.mulf %58, %58 : vector<16x16xf32>
    %61 = arith.addf %59, %60 : vector<16x16xf32>
    %62 = math.sqrt %61 : vector<16x16xf32>
    %c0_40 = arith.constant 0 : index
    %c0_41 = arith.constant 0 : index
    %c0_42 = arith.constant 0 : index
    %c0_43 = arith.constant 0 : index
    %63 = vector.load %arg2[%c0_40, %c0_41, %c0_42, %c0_43] : memref<1x3x16x16xf32, #tpu.memory_space<vmem>>, vector<1x3x16x16xf32>
    %c0_44 = arith.constant 0 : index
    %c0_45 = arith.constant 0 : index
    %c0_46 = arith.constant 0 : index
    %c0_47 = arith.constant 0 : index
    %64 = vector.load %arg5[%c0_44, %c0_45, %c0_46, %c0_47] : memref<1x4x16x16xf32, #tpu.memory_space<vmem>>, vector<1x3x16x16xf32>
    tpu.vector_store %arg5[%c0_44, %c0_45, %c0_46, %c0_47], %63 {strides = array<i32>} : memref<1x4x16x16xf32, #tpu.memory_space<vmem>>, vector<1x3x16x16xf32>,
    %65 = vector.shape_cast %62 : vector<16x16xf32> to vector<1x1x16x16xf32>
    %c0_48 = arith.constant 0 : index
    %c3 = arith.constant 3 : index
    %c0_49 = arith.constant 0 : index
    %c0_50 = arith.constant 0 : index
    %66 = vector.load %arg5[%c0_48, %c3, %c0_49, %c0_50] : memref<1x4x16x16xf32, #tpu.memory_space<vmem>>, vector<1x1x16x16xf32>
    tpu.vector_store %arg5[%c0_48, %c3, %c0_49, %c0_50], %65 {strides = array<i32>} : memref<1x4x16x16xf32, #tpu.memory_space<vmem>>, vector<1x1x16x16xf32>,
    %67 = tpu.iota {dimensions = array<i32: 3>} : vector<1x1x1x2xi32>
    %c0_i32_51 = arith.constant 0 : i32
    %68 = vector.broadcast %c0_i32_51 : i32 to vector<1x1x1x2xi32>
    %69 = arith.cmpi eq, %67, %68 : vector<1x1x1x2xi32>
    %70 = vector.shape_cast %62 : vector<16x16xf32> to vector<1x16x16xf32>
    %cst_52 = arith.constant dense<0x7F800000> : vector<1xf32>
    %71 = vector.multi_reduction <minimumf>, %70, %cst_52 [1, 2] : vector<1x16x16xf32> to vector<1xf32>
    %72 = vector.shape_cast %71 : vector<1xf32> to vector<1x1x1xf32>
    %73 = vector.extract %72[0, 0, 0] : f32 from vector<1x1x1xf32>
    %74 = vector.shape_cast %62 : vector<16x16xf32> to vector<1x16x16xf32>
    %cst_53 = arith.constant dense<0xFF800000> : vector<1xf32>
    %75 = vector.multi_reduction <maximumf>, %74, %cst_53 [1, 2] : vector<1x16x16xf32> to vector<1xf32>
    %76 = vector.shape_cast %75 : vector<1xf32> to vector<1x1x1xf32>
    %77 = vector.extract %76[0, 0, 0] : f32 from vector<1x1x1xf32>
    %78 = vector.broadcast %73 : f32 to vector<1x1x1x2xf32>
    %79 = vector.broadcast %77 : f32 to vector<1x1x1x2xf32>
    %80 = arith.select %69, %78, %79 : vector<1x1x1x2xi1>, vector<1x1x1x2xf32>
    %c0_54 = arith.constant 0 : index
    %c0_55 = arith.constant 0 : index
    %c0_56 = arith.constant 0 : index
    %c0_57 = arith.constant 0 : index
    %81 = vector.load %arg6[%c0_54, %c0_55, %c0_56, %c0_57] : memref<1x1x1x2xf32, #tpu.memory_space<vmem>>, vector<1x1x1x2xf32>
    tpu.vector_store %arg6[%c0_54, %c0_55, %c0_56, %c0_57], %80 {strides = array<i32>} : memref<1x1x1x2xf32, #tpu.memory_space<vmem>>, vector<1x1x1x2xf32>,
    return
  }
  func.func @transform_0(%arg0: i32, %arg1: i32) -> (i32, i32, i32, i32) {
    %c0_i32 = arith.constant 0 : i32
    %c0_i32_0 = arith.constant 0 : i32
    %c0_i32_1 = arith.constant 0 : i32
    return %arg0, %c0_i32, %arg1, %c0_i32_0 : i32, i32, i32, i32
  }
  func.func @transform_1(%arg0: i32, %arg1: i32) -> (i32, i32, i32, i32) {
    %c2_i32 = arith.constant 2 : i32
    %0 = arith.muli %arg1, %c2_i32 : i32
    %c1_i32 = arith.constant 1 : i32
    %1 = arith.subi %0, %c1_i32 : i32
    %c0_i32 = arith.constant 0 : i32
    %2 = arith.maxsi %1, %c0_i32 : i32
    %c0_i32_0 = arith.constant 0 : i32
    %c0_i32_1 = arith.constant 0 : i32
    %c0_i32_2 = arith.constant 0 : i32
    return %arg0, %c0_i32_0, %2, %c0_i32_1 : i32, i32, i32, i32
  }
  func.func @transform_2(%arg0: i32, %arg1: i32) -> (i32, i32, i32, i32) {
    %c1_i32 = arith.constant 1 : i32
    %0 = arith.addi %arg1, %c1_i32 : i32
    %c2_i32 = arith.constant 2 : i32
    %1 = arith.muli %0, %c2_i32 : i32
    %c1_i32_0 = arith.constant 1 : i32
    %2 = arith.minsi %1, %c1_i32_0 : i32
    %c0_i32 = arith.constant 0 : i32
    %c0_i32_1 = arith.constant 0 : i32
    %c0_i32_2 = arith.constant 0 : i32
    return %arg0, %c0_i32, %2, %c0_i32_1 : i32, i32, i32, i32
  }
  func.func @transform_3(%arg0: i32, %arg1: i32) -> (i32, i32, i32, i32) {
    %c0_i32 = arith.constant 0 : i32
    %c0_i32_0 = arith.constant 0 : i32
    %c0_i32_1 = arith.constant 0 : i32
    return %arg0, %c0_i32, %arg1, %c0_i32_0 : i32, i32, i32, i32
  }
  func.func @transform_4(%arg0: i32, %arg1: i32) -> (i32, i32, i32, i32) {
    %c0_i32 = arith.constant 0 : i32
    %c0_i32_0 = arith.constant 0 : i32
    %c0_i32_1 = arith.constant 0 : i32
    return %arg0, %arg1, %c0_i32, %c0_i32_0 : i32, i32, i32, i32
  }
}

</mosaic_0001>

<bundles_post_ra>
// kernel: _edge_embedding_impl.2
= control target key start
LH: loop header
LB: loop body
LE: loop exit
PB: predicated region body
PF: predicated region fallthrough
CT: control target
= control target key end

     0   :  { %s1372_s0 = inlined_call_operand.hbm [shape: f32[2,3,16,16], index: 0, kind: input, shape index: {}, may-alias: {0,1,2}]   ;;  %s1373_s1 = inlined_call_operand.hbm [shape: f32[2,3,16,16], index: 1, kind: input, shape index: {}, may-alias: {0,1,2}]   ;;  %s1374_s2 = inlined_call_operand.hbm [shape: f32[2,3,16,16], index: 2, kind: input, shape index: {}, may-alias: {0,1,2}]   ;;  %s1375_s3 = inlined_call_operand.hbm [shape: f32[2,4,16,16], index: 3, kind: output, shape index: {0}]   ;;  %s1376_s4 = inlined_call_operand.vmem [shape: f32[2,1,1,2], index: 4, kind: output, shape index: {1}]  }
   0x1   :  { %1388 = sst [smem:[#allocation16_spill]] %s1373_s1 }
   0x2   :  { %10 = vsyncpa [#allocation3], 0 }
   0x3   :  { %12 = vsyncpa [#allocation3 + $0x1], 0 }
   0x4   :  { %13 = vsyncpa [#allocation6], 0 }
   0x5   :  { %15 = vsyncpa [#allocation6 + $0x1], 0 }
   0x6   :  { %16 = vsyncpa [#allocation4], 0 }
   0x7   :  { %18 = vsyncpa [#allocation4 + $0x1], 0  ;;  %s1066_s15 = smov 0   ;;  %s1068_s16 = smov 0  }
   0x8   :  { %s1070_s17 = smov 0   ;;  %s1072_s18 = smov 0  }
   0x9   :  { %s1074_s19 = smov 0   ;;  %s1076_s20 = smov 0  }
   0xa LB: > { %1389 = sst [smem:[#allocation12_spill]] %s1015_s17  ;;  %s1097_s21 = sadd.s32 4294967295, %s1027_s20   ;;  %s1027_s20 = sphi %s1076_s20, %s24_s20   ;;  %s1023_s19 = sphi %s1074_s19, %s1413_s19   ;;  %s1019_s18 = sphi %s1072_s18, %s1416_s18   ;;  %s1015_s17 = sphi %s1070_s17, %s1411_s17   ;;  %s1011_s16 = sphi %s1068_s16, %s1415_s16   ;;  %s1007_s15 = sphi %s1066_s15, %s1414_s15  }
   0xb   : > { %1390 = sst [smem:[#allocation13_spill]] %s1023_s19  ;;  %s729_s22 = sadd.s32 4294967294, %s1027_s20  }
   0xc   : > { %s36_s23 = sadd.s32 1, %s1023_s19  ;;  %s45_s24 = sadd.s32 1, %s1015_s17 }
   0xd   : > { %p38_p0 = scmp.ge.s32.totalorder %s36_s23, 2  ;;  %p52_p1 = scmp.ne.s32.totalorder %s1015_s17, %s1011_s16 }
   0xe   : > { %p53_p2 = scmp.eq.s32.totalorder %s1027_s20, 0  ;;  %p58_p3 = scmp.ne.s32.totalorder %s1011_s16, %s1007_s15 }
   0xf   : > { %s1418_s23 = smov (%p38_p0, %s36_s23), 0  ;;  %p59_p5 = scmp.eq.s32.totalorder %s1097_s21, 0 }
  0x10   : > { %1391 = sst [smem:[#allocation14_spill]] %s1418_s23  ;;  %p1109_p4 = por %p53_p2, %p52_p1 }
  0x11   : > { %s40_s26 = ssub.s32 %s1023_s19, %s1418_s23  ;;  %p156_p6 = scmp.eq.s32.totalorder %s1097_s21, 1 }
  0x12   : > { %p43_p7 = scmp.eq.s32.totalorder %s40_s26, 0  ;;  %p1117_p8 = por %p59_p5, %p58_p3 }
  0x13   : > { %p1121_p9 = por %p156_p6, %p52_p1  ;;  %p162_p10 = scmp.eq.s32.totalorder %s729_s22, 1 }
  0x14   : > { %s1393_s27 = scalar_select %p1117_p8, 1, 0 }
  0x15   : > { %s1394_s28 = scalar_select %p1121_p9, 1, 0 }
  0x16   : > { %s1126_s29 = scalar_select %p43_p7, %s1015_s17, %s45_s24  }
  0x17   : > { %p1128_p11 = por %p162_p10, %p58_p3  ;;  %p788_p13 = scmp.lt.s32.totalorder %s1027_s20, 2 }
  0x18   : > { %1395 = sst [smem:[#allocation15_spill]] %s1126_s29  ;;  %s1135_s5 = sand.u32 1, %s1015_s17  }
  0x19   : > { %s1396_s30 = scalar_select %p1128_p11, 1, 0 }
  0x1a   : > { %s1138_s6 = smul.u32 768, %s1023_s19  ;;  %p1142_p0 = pnand %p788_p13, %p1109_p4 }
  0x1b   : > { %s233_s8 = sand.u32 1, %s1027_s20   ;;  %s1377_s9 = smul.u32 24, %s1135_s5 }
  0x1c   : > { %s1398_s1 = sld [smem:[#allocation16_spill]]  ;;  %s1158_s22 = scalar_lea.sflag [#allocation6], %s233_s8 }
  0x1d   : > { %s237_s13 = scalar_lea.vmem [#allocation5], %s1377_s9  ;;  %p1164_p2 = pneg %p1142_p0 }
  0x1e   : > { %s249_s14 = sshll.u32 %s237_s13, 4  ;;  %s1156_s14 = int_to_ptr.vmem [resolvable:$true] %s249_s14 }
  0x22   : > { %s1152_s12 = scalar_lea.hbm %s1398_s1, %s1138_s6  ;;  %s856_s11 = scalar_lea.hbm %s1398_s1, 1536 }
  0x23   : > { %s851_s24 = scalar_lea.hbm %s1152_s12, 384  ;;  %p857_p5 = scmp.lt.u32.totalorder %s1152_s12, %s1398_s1 }
  0x24   : > { %p852_p1 = scmp.ne.s32.totalorder %s1152_s12, %s851_s24  ;;  %p858_p6 = scmp.lt.u32.totalorder %s856_s11, %s851_s24 }
  0x25   : > { %p860_p10 = scmp.lt.u32.totalorder %s851_s24, %s1152_s12 }
  0x26   : > { %p854_p3 = pnand %p1164_p2, %p852_p1  ;;  %p859_p7 = por %p858_p6, %p857_p5 }
  0x28   : > { %p855_p4 = pneg %p854_p3  ;;  %p861_p13 = por %p860_p10, %p859_p7 }
  0x2a   : > { %p862_p12 = pnand %p861_p13, %p855_p4 }
  0x2c   : > { %865 = shalt.err (!%p862_p12)
}
  0x2d   : > { %s866_s8 = scalar_lea.vmem %s1156_s14, 384  ;;  %s1029_s26 = smov [#allocation5]  }
  0x2e   : > { %p867_p1 = scmp.ne.s32.totalorder %s1156_s14, %s866_s8  ;;  %s871_s10 = sshll.u32 %s1029_s26, 4  ;;  %s872_s10 = int_to_ptr.vmem [resolvable:$false] %s871_s10 }
  0x2f   : > { %s873_s9 = scalar_lea.vmem %s872_s10, 768  ;;  %p874_p9 = scmp.lt.s32.totalorder %s1156_s14, %s872_s10 }
  0x30   : > { %p869_p3 = pnand %p867_p1, %p1164_p2  ;;  %p875_p8 = scmp.lt.s32.totalorder %s873_s9, %s866_s8 }
  0x32   : > { %p870_p11 = pneg %p869_p3  ;;  %p876_p5 = por %p875_p8, %p874_p9 }
  0x34   : > { %p877_p6 = pnand %p876_p5, %p870_p11 }
  0x36   : > { %880 = shalt.err (!%p877_p6)
}
  0x37   : > { %s1382_s24 = smov 256   ;;  %s1383_s11 = smov 128  }
  0x38   : > { %s1385_s13 = smov 8   ;;  %p735_p8 = scmp.ge.s32.totalorder %s1027_s20, 1 }
  0x39   : > { %780 = dma.hbm_to_vmem [thread:$0]  (!%p1142_p0), %s1152_s12, 384, %s1156_s14, %s1158_s22, %s1382_s24, %s1383_s11, %s1385_s13  }
  0x3a   : > { %p283_p9 = scmp.lt.s32.totalorder %s1027_s20, 3  ;;  %s755_s26 = smul.u32 48, %s1135_s5 }
  0x3b   : > { %s1202_s1 = scalar_lea.hbm %s1372_s0, %s1138_s6  ;;  %s753_s23 = sadd.s32 128, %s1138_s6 }
  0x3c   : > { %p1193_p11 = pnand %p735_p8, %p283_p9  ;;  %s1208_s12 = scalar_lea.hbm %s1374_s2, %s753_s23 }
  0x3d   : > { %s214_s14 = scalar_lea.vmem [#allocation2], %s755_s26  ;;  %s1401_s11 = smul.u32 24, %s1135_s5 }
  0x3e   : > { %s1400_s8 = scalar_select %p1193_p11, 1, 0 }
  0x3f   : > { %s223_s24 = sshll.u32 %s214_s14, 4  ;;  %s263_s13 = scalar_lea.vmem [#allocation7], %s1401_s11  ;;  %s1212_s24 = int_to_ptr.vmem [resolvable:$true] %s223_s24 }
  0x40   : > { %s275_s17 = sshll.u32 %s263_s13, 4  ;;  %s211_s10 = scalar_lea.sflag [#allocation3], %s1135_s5  ;;  %s1214_s17 = int_to_ptr.vmem [resolvable:$true] %s275_s17 }
  0x41   : > { %s881_s9 = scalar_lea.hbm %s1202_s1, 768  ;;  %s886_s23 = scalar_lea.hbm %s1372_s0, 1536 }
  0x42   : > { %p882_p12 = scmp.ne.s32.totalorder %s1202_s1, %s881_s9  ;;  %p887_p10 = scmp.lt.u32.totalorder %s1202_s1, %s1372_s0 }
  0x43   : > { %p888_p13 = scmp.lt.u32.totalorder %s886_s23, %s881_s9  ;;  %p890_p3 = scmp.lt.u32.totalorder %s881_s9, %s1202_s1 }
  0x44   : > { %p884_p4 = pnand %p882_p12, %p1164_p2 }
  0x45   : > { %p889_p1 = por %p888_p13, %p887_p10 }
  0x46   : > { %p885_p7 = pneg %p884_p4 }
  0x47   : > { %p891_p5 = por %p890_p3, %p889_p1 }
  0x49   : > { %p892_p6 = pnand %p891_p5, %p885_p7 }
  0x4b   : > { %895 = shalt.err (!%p892_p6)
}
  0x4c   : > { %s896_s11 = scalar_lea.vmem %s1212_s24, 768  ;;  %s1033_s13 = smov [#allocation2]  }
  0x4d   : > { %p897_p8 = scmp.ne.s32.totalorder %s1212_s24, %s896_s11  ;;  %s901_s14 = sshll.u32 %s1033_s13, 4  ;;  %s902_s14 = int_to_ptr.vmem [resolvable:$false] %s901_s14 }
  0x4e   : > { %s903_s6 = scalar_lea.vmem %s902_s14, 1536  ;;  %p904_p4 = scmp.lt.s32.totalorder %s1212_s24, %s902_s14 }
  0x4f   : > { %p899_p9 = pnand %p897_p8, %p1164_p2  ;;  %p905_p11 = scmp.lt.s32.totalorder %s903_s6, %s896_s11 }
  0x51   : > { %p900_p12 = pneg %p899_p9  ;;  %p906_p10 = por %p905_p11, %p904_p4 }
  0x53   : > { %p907_p13 = pnand %p906_p10, %p900_p12 }
  0x55   : > { %910 = shalt.err (!%p907_p13)
}
  0x56   : > { %s1402_s9 = smov 8   ;;  %s1403_s19 = smov 128  }
  0x57   : > { %777 = dma.hbm_to_vmem [thread:$0]  (!%p1142_p0), %s1202_s1, 768, %s1212_s24, %s211_s10, %s1403_s19, %s1403_s19, %s1402_s9  }
  0x58   : > { %s911_s23 = scalar_lea.hbm %s1208_s12, 384  ;;  %s916_s11 = scalar_lea.hbm %s1374_s2, 1536 }
  0x59   : > { %p912_p7 = scmp.ne.s32.totalorder %s1208_s12, %s911_s23  ;;  %p917_p3 = scmp.lt.u32.totalorder %s1208_s12, %s1374_s2 }
  0x5a   : > { %p918_p5 = scmp.lt.u32.totalorder %s916_s11, %s911_s23  ;;  %p920_p8 = scmp.lt.u32.totalorder %s911_s23, %s1208_s12 }
  0x5b   : > { %p914_p11 = pnand %p912_p7, %p1164_p2 }
  0x5c   : > { %p919_p6 = por %p918_p5, %p917_p3 }
  0x5d   : > { %p915_p1 = pneg %p914_p11 }
  0x5e   : > { %p921_p9 = por %p920_p8, %p919_p6 }
  0x60   : > { %p922_p12 = pnand %p921_p9, %p915_p1 }
  0x62   : > { %925 = shalt.err (!%p922_p12)
}
  0x63   : > { %s926_s1 = scalar_lea.vmem %s1214_s17, 384  ;;  %s1034_s5 = smov [#allocation7]  }
  0x64   : > { %p927_p4 = scmp.ne.s32.totalorder %s1214_s17, %s926_s1  ;;  %s931_s24 = sshll.u32 %s1034_s5, 4  ;;  %s932_s24 = int_to_ptr.vmem [resolvable:$false] %s931_s24 }
  0x65   : > { %s933_s10 = scalar_lea.vmem %s932_s24, 768  ;;  %p934_p7 = scmp.lt.s32.totalorder %s1214_s17, %s932_s24 }
  0x66   : > { %p929_p10 = pnand %p927_p4, %p1164_p2  ;;  %p935_p11 = scmp.lt.s32.totalorder %s933_s10, %s926_s1 }
  0x68   : > { %p930_p13 = pneg %p929_p10  ;;  %p936_p3 = por %p935_p11, %p934_p7 }
  0x6a   : > { %p937_p5 = pnand %p936_p3, %p930_p13 }
  0x6c   : > { %940 = shalt.err (!%p937_p5)
}
  0x6d   : > { %s1404_s6 = smov 256   ;;  %p1405_p2 = scmp.ne.s32.totalorder %s1400_s8, 0 }
  0x6e   : > { %783 = dma.hbm_to_vmem [thread:$0]  (!%p1142_p0), %s1208_s12, 384, %s1214_s17, %s1158_s22, %s1404_s6, %s1403_s19, %s1402_s9  }
  0x6f   : > { %287 = sbr.rel (%p1405_p2) target bundleno = 496 (0x1f0), region = 32  ;;  %s1271_s25 = sand.u32 (!%p1405_p2), 1, %s1011_s16  }
  0x70   : > { %s761_s23 = smul.u32 (!%p1405_p2), 48, %s1271_s25  ;;  %s290_s29 = scalar_lea.sflag (!%p1405_p2), [#allocation3], %s1271_s25 }
  0x71   : > { %p1406_p1 = scmp.ne.s32.totalorder (!%p1405_p2), %s1393_s27, 0 }
  0x72   : > { %s293_s26 = scalar_lea.vmem (!%p1405_p2), [#allocation2], %s761_s23 }
  0x76   : > { %994 = dma.done.wait (%p1406_p1), %s290_s29, 768  }
  0x77   : > { %996 = vsyncadd (%p1406_p1), %s290_s29, 4294966528  ;;  %s298_s17 = sand.u32 1, %s1097_s21  }
  0x78   : > { %s299_s7 = scalar_lea.sflag [#allocation6], %s298_s17 }
  0x79   : > { %998 = dma.done.wait (%p1406_p1), %s299_s7, 768  }
  0x7a   : > { %1000 = vsyncadd (%p1406_p1), %s299_s7, 4294966528  ;;  %s736_s22 = sshll.u32 %s1271_s25, 6  ;;  %v368_v0 = vld [vmem:[%s293_s26] sm:$0xff]  ;;  %v369_v1 = vld [vmem:[%s293_s26 + $0x8] sm:$0xff]  ;;  %vm501_vm0 = vcmask 130048   ;;  %vm406_vm1 = vcmask 1040384  }
  0x7b   : > { %v737_v2 = vld [vmem:[%s293_s26 + $0x10] sm:$0xff]  ;;  %v738_v3 = vld [vmem:[%s293_s26 + $0x18] sm:$0xff]  ;;  %v739_v5 = vld [vmem:[%s293_s26 + $0x20] sm:$0xff]  ;;  %s1285_s8 = scalar_lea.vmem [#allocation8], %s736_s22  ;;  %v1035_v12 = vmov 0.0   ;;  %vm413_vm2 = vcmask 1046528  }
  0x7c   : > { %v373_v4 = vadd.f32 %v737_v2, %v368_v0  ;;  %v740_v6 = vld [vmem:[%s293_s26 + $0x28] sm:$0xff]  ;;  %502 = vst.msk [vmem:[%s1285_s8] sm:$0xff] %vm501_vm0, %v368_v0  ;;  %503 = vst.msk [vmem:[%s1285_s8 + $0x8] sm:$0xff] %vm501_vm0, %v369_v1  ;;  %v374_v7 = vadd.f32 %v738_v3, %v369_v1  ;;  %v420_v13 = vrot.slane %v1035_v12, 1  ;;  %s1036_s21 = smov 127   ;;  %s1037_s27 = smov 1  }
  0x7d   : > { %504 = vst.msk [vmem:[%s1285_s8 + $0x10] sm:$0xff] %vm501_vm0, %v737_v2  ;;  %505 = vst.msk [vmem:[%s1285_s8 + $0x18] sm:$0xff] %vm501_vm0, %v738_v3  ;;  %vm439_vm3 = vcmask 7168   ;;  %vm448_vm4 = vcmask 121856   ;;  %s754_s12 = sshll.u32 %s1019_s18, 10  ;;  %s565_s9 = sshll.u32 %s1285_s8, 4  ;;  %s1318_s9 = int_to_ptr.vmem [resolvable:$true] %s565_s9 }
  0x7e   : > { %506 = vst.msk [vmem:[%s1285_s8 + $0x20] sm:$0xff] %vm501_vm0, %v739_v5  ;;  %507 = vst.msk [vmem:[%s1285_s8 + $0x28] sm:$0xff] %vm501_vm0, %v740_v6  ;;  %v378_v8 = vadd.f32 %v739_v5, %v373_v4  ;;  %v379_v9 = vadd.f32 %v740_v6, %v374_v7  ;;  %s1316_s13 = scalar_lea.hbm %s1375_s3, %s754_s12  ;;  %s544_s14 = scalar_lea.sflag [#allocation4], %s1271_s25 }
  0x7f   : > { %s941_s1 = scalar_lea.vmem %s1318_s9, 1024  ;;  %p1407_p6 = scmp.ne.s32.totalorder %s1394_s28, 0 }
  0x80   : > { %v380_v10 = vmul.f32 0.33333334, %v378_v8  ;;  %v381_v11 = vmul.f32 0.33333334, %v379_v9  ;;  %p942_p0 = scmp.ne.s32.totalorder %s1318_s9, %s941_s1  ;;  %s1038_s5 = smov [#allocation8]  }
  0x81   : > { %s945_s24 = sshll.u32 %s1038_s5, 4  ;;  %s946_s24 = int_to_ptr.vmem [resolvable:$false] %s945_s24 }
  0x82   : > { %v407_v14 = vrot.slane %v380_v10, 7  ;;  %v414_v15 = vrot.slane %v380_v10, 1  ;;  %v415_v16 = vrot.slane %v381_v11, 1  ;;  %v408_v17 = vrot.slane %v381_v11, 7  ;;  %p943_p8 = pnand %p942_p0, %p1407_p6  ;;  %s947_s10 = scalar_lea.vmem %s946_s24, 2048 }
  0x83   : > { %v426_v19 = vmul.f32 2.0, %v381_v11  ;;  %v425_v20 = vmul.f32 2.0, %v380_v10  ;;  %p948_p12 = scmp.lt.s32.totalorder %s1318_s9, %s946_s24  ;;  %p949_p4 = scmp.lt.s32.totalorder %s947_s10, %s941_s1 }
  0x84   : > { %v412_v18 = vsel %vm406_vm1, 0.0, %v407_v14  ;;  %v416_v21 = vsel %vm413_vm2, %v414_v15, %v415_v16  ;;  %v409_v22 = vsel %vm406_vm1, %v407_v14, %v408_v17  ;;  %v422_v23 = vsel %vm413_vm2, %v415_v16, %v420_v13  ;;  %p944_p9 = pneg %p943_p8 }
  0x85   : > { %v423_v24 = vsub.f32 %v416_v21, %v412_v18  ;;  %v424_v25 = vsub.f32 %v422_v23, %v409_v22  ;;  %v428_v26 = vadd.f32 %v426_v19, %v409_v22  ;;  %v427_v27 = vadd.f32 %v425_v20, %v412_v18  ;;  %p950_p10 = por %p949_p4, %p948_p12 }
  0x87   : > { %442 = vrot.lane.b32.xlu1 %v423_v24, %s1036_s21  ;;  %433 = vrot.lane.b32.xlu0 %v423_v24, %s1037_s27  ;;  %v430_v28 = vadd.f32 %v428_v26, %v422_v23  ;;  %v429_v29 = vadd.f32 %v427_v27, %v416_v21  ;;  %v469_v32 = vmul.f32 2.0, %v423_v24  ;;  %v470_v35 = vmul.f32 2.0, %v424_v25  ;;  %p951_p13 = pnand %p950_p10, %p944_p9 }
  0x8b   : > { %444 = vrot.lane.b32.xlu1 %v424_v25, %s1036_s21  ;;  %435 = vrot.lane.b32.xlu0 %v424_v25, %s1037_s27 }
  0x8f   : > { %455 = vrot.lane.b32.xlu1 %v430_v28, %s1037_s27  ;;  %453 = vrot.lane.b32.xlu0 %v429_v29, %s1037_s27 }
  0x93   : > { %463 = vrot.lane.b32.xlu1 %v430_v28, %s1036_s21  ;;  %461 = vrot.lane.b32.xlu0 %v429_v29, %s1036_s21 }
  0xf9   : > { %v443_v30 = vpop.permute.xlu1 %442  ;;  %v434_v31 = vpop.permute.xlu0 %433 }
  0xfa   : > { %v440_v36 = vsel %vm439_vm3, 0.0, %v434_v31  ;;  %v449_v42 = vsel %vm448_vm4, %v443_v30, 0.0 }
  0xfb   : > { %v471_v38 = vadd.f32 %v469_v32, %v440_v36 }
  0xfd   : > { %v445_v33 = vpop.permute.xlu1 %444  ;;  %v436_v34 = vpop.permute.xlu0 %435  ;;  %v473_v44 = vadd.f32 %v471_v38, %v449_v42 }
  0xfe   : > { %v441_v37 = vsel %vm439_vm3, 0.0, %v436_v34  ;;  %v450_v43 = vsel %vm448_vm4, %v445_v33, 0.0 }
  0xff   : > { %v472_v39 = vadd.f32 %v470_v35, %v441_v37  ;;  %v477_v54 = vmul.f32 %v473_v44, %v473_v44 }
 0x101   : > { %v456_v40 = vpop.permute.xlu1 %455  ;;  %v454_v41 = vpop.permute.xlu0 %453  ;;  %v474_v45 = vadd.f32 %v472_v39, %v450_v43 }
 0x102   : > { %v460_v48 = vsel %vm439_vm3, 0.0, %v456_v40  ;;  %v459_v49 = vsel %vm439_vm3, 0.0, %v454_v41 }
 0x103   : > { %v478_v55 = vmul.f32 %v474_v45, %v474_v45 }
 0x105   : > { %v464_v46 = vpop.permute.xlu1 %463  ;;  %v462_v47 = vpop.permute.xlu0 %461 }
 0x106   : > { %v468_v50 = vsel %vm448_vm4, %v464_v46, 0.0  ;;  %v467_v51 = vsel %vm448_vm4, %v462_v47, 0.0 }
 0x107   : > { %v476_v52 = vsub.f32 %v468_v50, %v460_v48  ;;  %v475_v53 = vsub.f32 %v467_v51, %v459_v49 }
 0x109   : > { %v480_v56 = vmul.f32 %v476_v52, %v476_v52  ;;  %v479_v57 = vmul.f32 %v475_v53, %v475_v53 }
 0x10b   : > { %v482_v58 = vadd.f32 %v480_v56, %v478_v55  ;;  %v481_v59 = vadd.f32 %v479_v57, %v477_v54 }
 0x10d   : > { %847 = vrsqrt.f32 %v482_v58  ;;  %vm492_vm5 = vcmp.eq.f32.partialorder %v482_v58, inf  ;;  %v495_v0 = vand.u32 2147483648, %v482_v58  ;;  %vm485_vm6 = vcmp.eq.f32.partialorder %v481_v59, inf }
 0x10e   : > { %849 = vrsqrt.f32 %v481_v59  ;;  %v488_v1 = vand.u32 2147483648, %v481_v59  ;;  %vm494_vm7 = vcmp.eq.f32.partialorder %v482_v58, 0.0  ;;  %vm487_vm8 = vcmp.eq.f32.partialorder %v481_v59, 0.0 }
 0x117   : > { %v848_v60 = vpop.eup %847 }
 0x118   : > { %v850_v61 = vpop.eup %849  ;;  %v491_v62 = vmul.f32 %v848_v60, %v482_v58 }
 0x119   : > { %v484_v63 = vmul.f32 %v850_v61, %v481_v59 }
 0x11a   : > { %v493_v2 = vsel %vm492_vm5, %v482_v58, %v491_v62 }
 0x11b   : > { %v486_v3 = vsel %vm485_vm6, %v481_v59, %v484_v63  ;;  %v496_v4 = vsel %vm494_vm7, %v495_v0, %v493_v2 }
 0x11c   : > { %v489_v5 = vsel %vm487_vm8, %v488_v1, %v486_v3  ;;  %v527_v6 = vsel %vm501_vm0, %v496_v4, -inf  ;;  %746 = vst.msk [vmem:[%s1285_s8 + $0x38] sm:$0xff] %vm501_vm0, %v496_v4  ;;  %v515_v7 = vsel %vm501_vm0, %v496_v4, inf }
 0x11d   : > { %745 = vst.msk [vmem:[%s1285_s8 + $0x30] sm:$0xff] %vm501_vm0, %v489_v5  ;;  %v526_v8 = vsel %vm501_vm0, %v489_v5, -inf  ;;  %v514_v9 = vsel %vm501_vm0, %v489_v5, inf }
 0x11e   : > { %v528_v10 = vmax.f32 %v526_v8, %v527_v6  ;;  %v516_v11 = vmin.f32 %v514_v9, %v515_v7 }
 0x120   : > { %529 = vmax.xlane.f32.xlu1 %v528_v10  ;;  %517 = vmin.xlane.f32.xlu0 %v516_v11 }
 0x121   : > { %954 = shalt.err (!%p951_p13)
}
 0x122   : > { %s955_s6 = scalar_lea.hbm %s1316_s13, 1024  ;;  %s959_s26 = scalar_lea.hbm %s1375_s3, 2048 }
 0x123   : > { %p956_p7 = scmp.ne.s32.totalorder %s1316_s13, %s955_s6  ;;  %p960_p5 = scmp.lt.u32.totalorder %s1316_s13, %s1375_s3 }
 0x124   : > { %p961_p2 = scmp.lt.u32.totalorder %s959_s26, %s955_s6  ;;  %p963_p0 = scmp.lt.u32.totalorder %s955_s6, %s1316_s13 }
 0x125   : > { %p957_p11 = pnand %p956_p7, %p1407_p6 }
 0x126   : > { %p962_p1 = por %p961_p2, %p960_p5 }
 0x127   : > { %p958_p3 = pneg %p957_p11 }
 0x128   : > { %p964_p8 = por %p963_p0, %p962_p1 }
 0x12a   : > { %p965_p9 = pnand %p964_p8, %p958_p3 }
 0x12c   : > { %968 = shalt.err (!%p965_p9)
}
 0x12d   : > { %s1039_s22 = smov 128   ;;  %s1040_s8 = smov 8   ;;  %v511_v26 = vlaneseq  ;;  %vm541_vm10 = vcmask 8192  }
 0x12e   : > { %772 = dma.vmem_to_hbm [thread:$0]  (%p1407_p6), %s1318_s9, 1024, %s1316_s13, %s544_s14, %s1039_s22, %s1039_s22, %s1040_s8  }
 0x12f   : > { %p362_p6 = scmp.lt.s32.totalorder %s1019_s18, 1  ;;  %v512_v27 = vand.u32 127, %v511_v26 }
 0x131   : > { %s1420_s18 = smov (!%p362_p6, %s1019_s18), 1  ;;  %vm513_vm9 = vcmp.eq.s32.totalorder %v512_v27, 0 }
 0x132   : > { %s367_s27 = scalar_lea.vmem %s1376_s4, %s1420_s18 }
 0x1ad   : > { %v530_v12 = vpop.xlane.xlu1 %529  ;;  %v518_v13 = vpop.xlane.xlu0 %517 }
 0x1ae   : > { %v531_v14 = vrot.slane %v530_v12, 4  ;;  %v519_v15 = vrot.slane %v518_v13, 4 }
 0x1b0   : > { %v532_v16 = vmax.f32 %v530_v12, %v531_v14  ;;  %v520_v17 = vmin.f32 %v518_v13, %v519_v15 }
 0x1b2   : > { %v533_v18 = vrot.slane %v532_v16, 2  ;;  %v521_v19 = vrot.slane %v520_v17, 2 }
 0x1b4   : > { %v534_v20 = vmax.f32 %v532_v16, %v533_v18  ;;  %v522_v21 = vmin.f32 %v520_v17, %v521_v19 }
 0x1b6   : > { %v523_v22 = vrot.slane %v522_v21, 1  ;;  %v535_v23 = vrot.slane %v534_v20, 1 }
 0x1b8   : > { %v524_v24 = vmin.f32 %v522_v21, %v523_v22  ;;  %v536_v25 = vmax.f32 %v534_v20, %v535_v23 }
 0x1ba   : > { %762 = vpush %v524_v24 }
 0x1bb   : > { %764 = vpush %v536_v25 }
 0x1eb   : > { %s763_s28 = spop %762 }
 0x1ec   : > { %v538_v28 = vstv %s763_s28  ;;  %s765_s12 = spop %764 }
 0x1ed   : > { %v539_v29 = vstv %s765_s12 }
 0x1ee   : > { %v540_v30 = vsel %vm513_vm9, %v538_v28, %v539_v29 }
 0x1ef   : > { %542 = vst.msk [vmem:[%s367_s27] sm:$0x1] %vm541_vm10, %v540_v30 }
 0x1f0 PF: > { %s583_s9 = sand.u32 1, %s1007_s15   ;;  %p1408_p12 = scmp.ne.s32.totalorder %s1396_s30, 0 }
 0x1f1   : > { %p1409_p4 = scmp.ge.s32.totalorder %s1027_s20, 2  ;;  %s584_s19 = scalar_lea.sflag [#allocation4], %s583_s9 }
 0x1f3   : > { %p785_p10 = pnand %p1409_p4, %p1408_p12 }
 0x1f5   : > { %1002 = dma.done.wait (!%p785_p10), %s584_s19, 1024  }
 0x1f6   : > { %1004 = vsyncadd (!%p785_p10), %s584_s19, 4294966272  ;;  %s24_s20 = sadd.s32 1, %s1027_s20   ;;  %s1410_s18 = sld [smem:[#allocation12_spill]] }
 0x1f7   : > { %p21_p13 = scmp.ge.s32.totalorder %s24_s20, 4   ;;  %s1411_s17 = sld [smem:[#allocation15_spill]] }
 0x1f8   : > { %s1412_s11 = sld [smem:[#allocation13_spill]]  ;;  %s1413_s19 = sld [smem:[#allocation14_spill]] }
 0x1f9   : > { %s1414_s15 = smov %s1011_s16  ;;  %23 = sbr.rel (!%p21_p13) target bundleno = 10 (0xa), region = 120 }
 0x1fc   : > { %s1415_s16 = smov %s1410_s18 }
 0x1fe   : > { %s1416_s18 = smov %s1412_s11 }
 0x200   :  { %598 = vsyncpa [#allocation3], 1 }
 0x201   :  { %600 = vsyncpa [#allocation3 + $0x1], 1 }
 0x202   :  { %601 = vsyncpa [#allocation6], 1 }
 0x203   :  { %603 = vsyncpa [#allocation6 + $0x1], 1 }
 0x204   :  { %604 = vsyncpa [#allocation4], 1 }
 0x205   :  { %606 = vsyncpa [#allocation4 + $0x1], 1 }

// kernel: _edge_embedding_impl.3
= control target key start
LH: loop header
LB: loop body
LE: loop exit
PB: predicated region body
PF: predicated region fallthrough
CT: control target
= control target key end

     0   :  { %7 = vsyncpa [#allocation5], 0  ;;  %s812_s0 = inlined_call_operand.vmem [shape: f32[2], index: 0, kind: input, shape index: {}]   ;;  %s813_s1 = inlined_call_operand.hbm [shape: f32[2,4,16,16], index: 1, kind: input, shape index: {}, may-alias: {1,2}]   ;;  %s814_s2 = inlined_call_operand.hbm [shape: f32[2,4,16,16], index: 2, kind: output, shape index: {}, may-alias: {1,2}]  }
   0x1   :  { %8 = vsyncpa [#allocation3], 0 }
   0x2   :  { %10 = vsyncpa [#allocation3 + $0x1], 0 }
   0x3   :  { %11 = vsyncpa [#allocation4], 0 }
   0x4   :  { %13 = vsyncpa [#allocation4 + $0x1], 0  ;;  %s602_s9 = smov 0   ;;  %s604_s10 = smov 0  }
   0x5   :  { %s606_s11 = smov 0   ;;  %s608_s12 = smov 0  }
   0x6   :  { %s610_s13 = smov 0   ;;  %s612_s14 = smov 0  }
   0x7 LB: > { %s344_s15 = sadd.s32 4294967295, %s578_s14   ;;  %s345_s16 = sadd.s32 4294967294, %s578_s14   ;;  %s578_s14 = sphi %s612_s14, %s19_s14   ;;  %s574_s13 = sphi %s610_s13, %s837_s13   ;;  %s570_s12 = sphi %s608_s12, %s836_s12   ;;  %s566_s11 = sphi %s606_s11, %s835_s11   ;;  %s562_s10 = sphi %s604_s10, %s834_s10   ;;  %s558_s9 = sphi %s602_s9, %s833_s9  }
   0x8   : > { %s61_s17 = sadd.s32 1, %s566_s11  ;;  %p68_p0 = scmp.ne.s32.totalorder %s566_s11, %s562_s10 }
   0x9   : > { %p69_p1 = scmp.eq.s32.totalorder %s578_s14, 0  ;;  %p74_p2 = scmp.ne.s32.totalorder %s562_s10, %s558_s9 }
   0xa   : > { %p640_p3 = scmp.eq.s32.totalorder %s344_s15, 0  ;;  %p100_p4 = scmp.eq.s32.totalorder %s344_s15, 1 }
   0xb   : > { %p644_p5 = por %p69_p1, %p68_p0  ;;  %p106_p6 = scmp.eq.s32.totalorder %s345_s16, 1 }
   0xc   : > { %s819_s18 = scalar_select %p640_p3, 1, 0 }
   0xd   : > { %p650_p7 = por %p640_p3, %p74_p2  ;;  %p654_p8 = por %p100_p4, %p68_p0 }
   0xe   : > { %p658_p9 = por %p106_p6, %p74_p2  ;;  %p346_p10 = scmp.ge.s32.totalorder %s578_s14, 1 }
   0xf   : > { %s821_s20 = scalar_select %p650_p7, 1, 0 }
  0x10   : > { %s822_s21 = scalar_select %p654_p8, 1, 0 }
  0x11   : > { %s823_s22 = scalar_select %p658_p9, 1, 0 }
  0x12   : > { %p113_p11 = scmp.lt.s32.totalorder %s578_s14, 3  ;;  %s126_s25 = sshll.u32 %s812_s0, 4  ;;  %s127_s25 = int_to_ptr.vmem [resolvable:$true] %s126_s25 }
  0x13   : > { %p385_p0 = scmp.lt.s32.totalorder %s578_s14, 2  ;;  %s31_s29 = sadd.s32 1, %s574_s13 }
  0x14   : > { %p667_p12 = pnand %p346_p10, %p113_p11  ;;  %p688_p6 = scmp.ge.s32.totalorder %s31_s29, 2 }
  0x15   : > { %p677_p2 = pnand %p385_p0, %p644_p5  ;;  %s137_s3 = sand.u32 1, %s566_s11  }
  0x16   : > { %p372_p1 = pneg %p667_p12  ;;  %s445_s4 = scalar_lea.vmem %s127_s25, 16 }
  0x17   : > { %p446_p10 = scmp.ne.s32.totalorder %s127_s25, %s445_s4  ;;  %p453_p13 = scmp.lt.s32.totalorder %s127_s25, %s127_s25 }
  0x18   : > { %p683_p4 = pnand %p372_p1, %p640_p3  ;;  %p454_p9 = scmp.lt.s32.totalorder %s445_s4, %s445_s4 }
  0x1a   : > { %p447_p11 = pneg %p683_p4  ;;  %p455_p8 = por %p454_p9, %p453_p13 }
  0x1c   : > { %p448_p5 = pnand %p447_p11, %p446_p10 }
  0x1e   : > { %p449_p0 = pneg %p448_p5 }
  0x20   : > { %p456_p1 = pnand %p455_p8, %p449_p0 }
  0x22   : > { %459 = shalt.err (!%p456_p1)
}
  0x23   : > { %s580_s5 = smov [#allocation2]   ;;  %s839_s29 = smov (%p688_p6, %s31_s29), 0 }
  0x24   : > { %375 = dma.vmem_to_smem (!%p683_p4), %s127_s25, 16, %s580_s5, [#allocation5]  }
  0x25   : > { %s349_s6 = sshll.u32 %s137_s3, 4  ;;  %s56_s7 = ssub.s32 %s574_s13, %s839_s29 }
  0x26   : > { %p59_p9 = scmp.eq.s32.totalorder %s56_s7, 0  ;;  %s362_s8 = sshll.u32 %s574_s13, 10 }
  0x27   : > { %s280_s19 = scalar_lea.hbm %s813_s1, %s362_s8  ;;  %s141_s23 = scalar_lea.vmem [#allocation6], %s349_s6 }
  0x28   : > { %s151_s24 = sshll.u32 %s141_s23, 4  ;;  %s712_s4 = scalar_lea.hbm %s280_s19, 768  ;;  %s714_s24 = int_to_ptr.vmem [resolvable:$true] %s151_s24 }
  0x29   : > { %s710_s28 = scalar_select %p59_p9, %s566_s11, %s61_s17  }
  0x2a   : > { %s716_s25 = scalar_lea.sflag [#allocation3], %s137_s3  ;;  %s490_s30 = scalar_lea.hbm %s280_s19, 1024 }
  0x2b   : > { %p461_p8 = scmp.ne.s32.totalorder %s712_s4, %s490_s30  ;;  %p462_p13 = pneg %p677_p2 }
  0x2c   : > { %s465_s6 = scalar_lea.hbm %s813_s1, 2048  ;;  %p466_p10 = scmp.lt.u32.totalorder %s712_s4, %s813_s1 }
  0x2d   : > { %p463_p4 = pnand %p462_p13, %p461_p8  ;;  %p467_p11 = scmp.lt.u32.totalorder %s465_s6, %s490_s30 }
  0x2e   : > { %p469_p0 = scmp.lt.u32.totalorder %s490_s30, %s712_s4 }
  0x2f   : > { %p464_p6 = pneg %p463_p4  ;;  %p468_p5 = por %p467_p11, %p466_p10 }
  0x31   : > { %p470_p1 = por %p469_p0, %p468_p5 }
  0x33   : > { %p471_p9 = pnand %p470_p1, %p464_p6 }
  0x35   : > { %474 = shalt.err (!%p471_p9)
}
  0x36   : > { %s475_s3 = scalar_lea.vmem %s714_s24, 256  ;;  %s581_s15 = smov [#allocation6]  }
  0x37   : > { %p476_p8 = scmp.ne.s32.totalorder %s714_s24, %s475_s3  ;;  %s480_s16 = sshll.u32 %s581_s15, 4  ;;  %s481_s16 = int_to_ptr.vmem [resolvable:$false] %s480_s16 }
  0x38   : > { %s482_s19 = scalar_lea.vmem %s481_s16, 512  ;;  %p483_p3 = scmp.lt.s32.totalorder %s714_s24, %s481_s16 }
  0x39   : > { %p478_p4 = pnand %p476_p8, %p462_p13  ;;  %p484_p10 = scmp.lt.s32.totalorder %s482_s19, %s475_s3 }
  0x3b   : > { %p479_p7 = pneg %p478_p4  ;;  %p485_p11 = por %p484_p10, %p483_p3 }
  0x3d   : > { %p486_p5 = pnand %p485_p11, %p479_p7 }
  0x3f   : > { %489 = shalt.err (!%p486_p5)
}
  0x40   : > { %s582_s23 = smov 128   ;;  %s583_s30 = smov 8  }
  0x41   : > { %379 = dma.hbm_to_vmem [thread:$0]  (!%p677_p2), %s712_s4, 256, %s714_s24, %s716_s25, %s582_s23, %s582_s23, %s583_s30  }
  0x42   : > { %163 = sbr.rel (%p667_p12) target bundleno = 132 (0x84), region = 28  ;;  %p828_p13 = scmp.ne.s32.totalorder (!%p667_p12), %s819_s18, 0 }
  0x49   : > { %545 = dma.done.wait (%p828_p13), [#allocation5], 16  }
  0x4a   : > { %547 = vsyncadd (%p828_p13), [#allocation5], 4294967280  ;;  %s750_s5 = sand.u32 1, %s562_s10   ;;  %p829_p3 = scmp.ne.s32.totalorder %s821_s20, 0 }
  0x4b   : > { %s354_s17 = sshll.u32 %s750_s5, 4  ;;  %s170_s6 = scalar_lea.sflag [#allocation3], %s750_s5 }
  0x4c   : > { %s173_s7 = scalar_lea.vmem [#allocation6], %s354_s17 }
  0x4d   : > { %549 = dma.done.wait (%p829_p3), %s170_s6, 256  }
  0x4e   : > { %551 = vsyncadd (%p829_p3), %s170_s6, 4294967040 }
  0x4f   : > { %178 = sfence }
  0x50   : > { %s197_s26 = sld [smem:[#allocation2]]  ;;  %s356_s27 = sld [smem:[#allocation2 + $0x1]]  ;;  %v199_v0 = vld [vmem:[%s173_s7] sm:$0xff]  ;;  %v200_v1 = vld [vmem:[%s173_s7 + $0x8] sm:$0xff]  ;;  %vm223_vm0 = vcmask 130048  }
  0x51   : > { %s363_s18 = sshll.u32 %s570_s12, 10  ;;  %s194_s20 = scalar_lea.vmem [#allocation7], %s354_s17 }
  0x52   : > { %s243_s24 = sshll.u32 %s194_s20, 4  ;;  %s298_s8 = scalar_lea.hbm %s814_s2, %s363_s18  ;;  %s762_s24 = int_to_ptr.vmem [resolvable:$true] %s243_s24 }
  0x53   : > { %s764_s12 = scalar_lea.hbm %s298_s8, 768  ;;  %s227_s3 = scalar_lea.sflag [#allocation4], %s750_s5 }
  0x54   : > { %s491_s15 = scalar_lea.vmem %s762_s24, 256  ;;  %p830_p12 = scmp.ne.s32.totalorder %s822_s21, 0 }
  0x55   : > { %p492_p7 = scmp.ne.s32.totalorder %s762_s24, %s491_s15  ;;  %s584_s16 = smov [#allocation7]  }
  0x56   : > { %v201_v2 = vstv %s197_s26  ;;  %v204_v4 = vstv %s356_s27  ;;  %s495_s19 = sshll.u32 %s584_s16, 4  ;;  %s496_s19 = int_to_ptr.vmem [resolvable:$false] %s495_s19 }
  0x57   : > { %v202_v3 = vsub.f32 %v199_v0, %v201_v2  ;;  %v203_v5 = vsub.f32 %v200_v1, %v201_v2  ;;  %p493_p2 = pnand %p492_p7, %p830_p12  ;;  %s497_s23 = scalar_lea.vmem %s496_s19, 512 }
  0x58   : > { %p498_p0 = scmp.lt.s32.totalorder %s762_s24, %s496_s19  ;;  %p499_p1 = scmp.lt.s32.totalorder %s497_s23, %s491_s15 }
  0x59   : > { %v205_v6 = vmul.f32 %v204_v4, %v202_v3  ;;  %v206_v7 = vmul.f32 %v204_v4, %v203_v5  ;;  %p494_p6 = pneg %p493_p2 }
  0x5a   : > { %p500_p9 = por %p499_p1, %p498_p0 }
  0x5b   : > { %v207_v8 = vadd.f32 0.01, %v205_v6  ;;  %v208_v9 = vadd.f32 0.01, %v206_v7 }
  0x5c   : > { %p501_p8 = pnand %p500_p9, %p494_p6 }
  0x5d   : > { %441 = vrcp.f32 %v207_v8 }
  0x5e   : > { %443 = vrcp.f32 %v208_v9 }
  0x67   : > { %v442_v10 = vpop.eup %441 }
  0x68   : > { %v444_v11 = vpop.eup %443  ;;  %v210_v12 = vmul.f32 %v442_v10, %v205_v6 }
  0x69   : > { %v212_v13 = vmul.f32 %v444_v11, %v206_v7 }
  0x6a   : > { %v213_v14 = vadd.f32 1.0, %v210_v12 }
  0x6b   : > { %v214_v15 = vadd.f32 1.0, %v212_v13 }
  0x6c   : > { %v215_v16 = vmul.f32 %v213_v14, %v205_v6 }
  0x6d   : > { %v216_v17 = vmul.f32 %v214_v15, %v206_v7 }
  0x6e   : > { %v217_v18 = vmax.f32 %v215_v16, 0.0 }
  0x6f   : > { %v218_v19 = vmax.f32 %v216_v17, 0.0 }
  0x70   : > { %v219_v20 = vmin.f32 %v217_v18, 1.0 }
  0x71   : > { %v220_v21 = vmin.f32 %v218_v19, 1.0 }
  0x72   : > { %v221_v22 = vmul.f32 255.0, %v219_v20 }
  0x73   : > { %v222_v23 = vmul.f32 255.0, %v220_v21 }
  0x74   : > { %224 = vst.msk [vmem:[%s194_s20] sm:$0xff] %vm223_vm0, %v221_v22 }
  0x75   : > { %225 = vst.msk [vmem:[%s194_s20 + $0x8] sm:$0xff] %vm223_vm0, %v222_v23 }
  0x76   : > { %504 = shalt.err (!%p501_p8)
}
  0x77   : > { %s519_s30 = scalar_lea.hbm %s298_s8, 1024  ;;  %s509_s7 = scalar_lea.hbm %s814_s2, 2048 }
  0x78   : > { %p506_p4 = scmp.ne.s32.totalorder %s764_s12, %s519_s30  ;;  %p510_p5 = scmp.lt.u32.totalorder %s764_s12, %s814_s2 }
  0x79   : > { %p511_p13 = scmp.lt.u32.totalorder %s509_s7, %s519_s30  ;;  %p513_p7 = scmp.lt.u32.totalorder %s519_s30, %s764_s12 }
  0x7a   : > { %p507_p10 = pnand %p506_p4, %p830_p12 }
  0x7b   : > { %p512_p3 = por %p511_p13, %p510_p5 }
  0x7c   : > { %p508_p11 = pneg %p507_p10 }
  0x7d   : > { %p514_p2 = por %p513_p7, %p512_p3 }
  0x7f   : > { %p515_p6 = pnand %p514_p2, %p508_p11 }
  0x81   : > { %518 = shalt.err (!%p515_p6)
}
  0x82   : > { %s585_s18 = smov 128   ;;  %s586_s20 = smov 8  }
  0x83   : > { %370 = dma.vmem_to_hbm [thread:$0]  (%p830_p12), %s762_s24, 256, %s764_s12, %s227_s3, %s585_s18, %s585_s18, %s586_s20  }
  0x84 PF: > { %s258_s4 = sand.u32 1, %s558_s9   ;;  %p831_p0 = scmp.ne.s32.totalorder %s823_s22, 0 }
  0x85   : > { %p832_p1 = scmp.ge.s32.totalorder %s578_s14, 2  ;;  %s259_s25 = scalar_lea.sflag [#allocation4], %s258_s4 }
  0x87   : > { %p381_p9 = pnand %p832_p1, %p831_p0 }
  0x89   : > { %553 = dma.done.wait (!%p381_p9), %s259_s25, 256  }
  0x8a   : > { %555 = vsyncadd (!%p381_p9), %s259_s25, 4294967040  ;;  %s19_s14 = sadd.s32 1, %s578_s14   ;;  %s833_s9 = smov %s562_s10 }
  0x8b   : > { %p16_p8 = scmp.ge.s32.totalorder %s19_s14, 4   ;;  %s834_s10 = smov %s566_s11 }
  0x8c   : > { %s835_s11 = smov %s710_s28  ;;  %s836_s12 = smov %s574_s13 }
  0x8d   : > { %s837_s13 = smov %s839_s29  ;;  %18 = sbr.rel (!%p16_p8) target bundleno = 7 (0x7), region = 78 }
  0x94   :  { %264 = vsyncpa [#allocation3], 1 }
  0x95   :  { %266 = vsyncpa [#allocation3 + $0x1], 1 }
  0x96   :  { %267 = vsyncpa [#allocation4], 1 }
  0x97   :  { %269 = vsyncpa [#allocation4 + $0x1], 1 }
  0x98   :  { %270 = vsyncpa [#allocation5], 1 }
  0x99   :  { %272 = vsyncpa [#allocation5 + $0x1], 1 }

</bundles_post_ra>
